<compile_context>
chip_gen: v7x
topology: tpu7x:2x2x1
jax: 0.10.0
libtpu: 0.0.40
codegen_flags: <defaults>
</compile_context>

<pallas_src>
import functools

import jax
import jax.numpy as jnp
from jax.experimental import pallas as pl
from jax.experimental.pallas import tpu as pltpu

_LANE = 128


def _round_up(x, m):
    return (x + m - 1) // m * m


def _mlp_kernel(obs_ref, w1_ref, b1_ref, w2_ref, b2_ref, w3_ref, b3_ref, o_ref):
    # obs block: [bt, seq*obs_dim] bf16, lane-dense.  w1 is zero-padded so only
    # the last-token rows contribute -> last-token select is free on the MXU.
    h1 = jnp.dot(obs_ref[...], w1_ref[...],
                 preferred_element_type=jnp.float32) + b1_ref[...]
    h1 = h1 * pl.reciprocal(1.0 + jnp.exp(-h1), approx=True)      # Swish (EUP)

    h2 = jnp.dot(h1.astype(jnp.bfloat16), w2_ref[...],
                 preferred_element_type=jnp.float32) + b2_ref[...]
    h2 = h2 * pl.reciprocal(1.0 + jnp.exp(-h2), approx=True)      # Swish (EUP)

    out = jnp.dot(h2.astype(jnp.bfloat16), w3_ref[...],
                  preferred_element_type=jnp.float32) + b3_ref[...]
    o_ref[...] = out.astype(o_ref.dtype)                          # lane-dense vst


def prepare_params(params, seq, obs_dim, action_dim):
    """One-time packing (call OUTSIDE the rollout loop):
       - w1 zero-padded to [seq*obs_dim, E] with the real rows at the
         last-token offset (folds obs[:, -1] selection into matmul #1),
       - weights -> bfloat16 (halves weight DMA, native MXU dtype),
       - last layer zero-padded to a lane-dense 128-wide output."""
    w1, b1, w2, b2, w3, b3 = params
    E = w1.shape[1]
    K = seq * obs_dim
    w1p = jnp.zeros((K, E), jnp.float32).at[(seq - 1) * obs_dim:, :].set(w1)

    a_pad = _round_up(max(action_dim, 1), _LANE)
    w3p = jnp.zeros((w3.shape[0], a_pad), jnp.float32).at[:, :action_dim].set(w3)
    b3p = jnp.zeros((1, a_pad), jnp.float32).at[:, :action_dim].set(b3)

    return (w1p.astype(jnp.bfloat16), b1.astype(jnp.float32),
            w2.astype(jnp.bfloat16), b2.astype(jnp.float32),
            w3p.astype(jnp.bfloat16), b3p.astype(jnp.float32))


def mlp_agent_forward(obs, prepped_params, action_dim, *, batch_tile=512):
    """obs: [batch, seq(n_agent), obs_dim] -> action: [batch, action_dim]."""
    w1, b1, w2, b2, w3, b3 = prepped_params
    B, seq, obs_dim = obs.shape
    K = seq * obs_dim
    assert w1.shape[0] == K, "prepare_params seq/obs_dim mismatch"
    E = w1.shape[1]
    A_pad = w3.shape[1]

    # Flatten seq into the feature axis (free reshape); bf16 halves the stream.
    obs2d = obs.reshape(B, K).astype(jnp.bfloat16)

    # Batch tiling:
    #   B <= 128          : single block (actor path; grid overhead dominates).
    #   128 < B           : >= 2 blocks of <= batch_tile rows so the "parallel"
    #                       axis spans both v7x TensorCores; block rows are a
    #                       multiple of 8 (sublane rule).
    if B <= 128:
        bt, B_pad = B, B
    else:
        bt = min(batch_tile, _round_up(pl.cdiv(B, 2), 8))
        B_pad = _round_up(B, bt)
    if B_pad != B:
        obs2d = jnp.pad(obs2d, ((0, B_pad - B), (0, 0)))
    n_blocks = B_pad // bt

    out = pl.pallas_call(
        _mlp_kernel,
        out_shape=jax.ShapeDtypeStruct((B_pad, A_pad), jnp.float32),
        grid=(n_blocks,),
        in_specs=[
            # obs: one lane-dense batch tile per grid step.
            pl.BlockSpec((bt, K), lambda i: (i, 0)),
            # weights / biases: full-extent blocks, resident across iterations.
            pl.BlockSpec((K, E), lambda i: (0, 0)),
            pl.BlockSpec((1, E), lambda i: (0, 0)),
            pl.BlockSpec((E, E), lambda i: (0, 0)),
            pl.BlockSpec((1, E), lambda i: (0, 0)),
            pl.BlockSpec((E, A_pad), lambda i: (0, 0)),
            pl.BlockSpec((1, A_pad), lambda i: (0, 0)),
        ],
        out_specs=pl.BlockSpec((bt, A_pad), lambda i: (i, 0)),
        compiler_params=pltpu.CompilerParams(
            dimension_semantics=("parallel",),
        ),
    )(obs2d, w1, b1, w2, b2, w3, b3)

    # Drop batch padding and the lane-padding of the last layer.
    return out[:B, :action_dim]


def init_params(key, obs_dim, embed_dim, action_dim):
    """Deterministic init mimicking nn.Linear (uniform(-1/sqrt(fan_in), +))."""
    def linear(k, fan_in, fan_out):
        kw, kb = jax.random.split(k)
        bound = 1.0 / jnp.sqrt(fan_in)
        w = jax.random.uniform(kw, (fan_in, fan_out), jnp.float32, -bound, bound)
        b = jax.random.uniform(kb, (1, fan_out), jnp.float32, -bound, bound)
        return w, b

    k1, k2, k3 = jax.random.split(key, 3)
    w1, b1 = linear(k1, obs_dim, embed_dim)
    w2, b2 = linear(k2, embed_dim, embed_dim)
    w3, b3 = linear(k3, embed_dim, action_dim)
    return (w1, b1, w2, b2, w3, b3)


if __name__ == "__main__":
    # Config-implied small shapes (mode='actor'):
    batch = 2
    n_agent = 8          # config.context_len
    obs_dim = 16         # config.obs_space
    action_dim = 4       # config.action_space
    embed_dim = 256      # hard-coded in the module

    key = jax.random.PRNGKey(0)
    k_obs, k_par = jax.random.split(key)

    obs = jax.random.normal(k_obs, (batch, n_agent, obs_dim), jnp.float32)
    raw_params = init_params(k_par, obs_dim, embed_dim, action_dim)
    params = prepare_params(raw_params, n_agent, obs_dim, action_dim)

    fwd = jax.jit(functools.partial(mlp_agent_forward, action_dim=action_dim))
    action = fwd(obs, params)
    jax.block_until_ready(action)
    assert action.shape == (batch, action_dim)

    # ---- reference 1: same math (bf16 weights, f32 accum, exact sigmoid);
    #      kernel uses approx-reciprocal Swish, so a slightly loose tolerance.
    w1, b1, w2, b2, w3, b3 = params
    xr = obs.reshape(batch, n_agent * obs_dim).astype(jnp.bfloat16)
    hr = jnp.dot(xr, w1, preferred_element_type=jnp.float32) + b1
    hr = hr * jax.nn.sigmoid(hr)
    hr = jnp.dot(hr.astype(jnp.bfloat16), w2, preferred_element_type=jnp.float32) + b2
    hr = hr * jax.nn.sigmoid(hr)
    ref_bf16 = (jnp.dot(hr.astype(jnp.bfloat16), w3,
                        preferred_element_type=jnp.float32) + b3)[:, :action_dim]
    assert jnp.allclose(action, ref_bf16, atol=1e-2, rtol=1e-2), "mismatch vs bf16 reference"

    # ---- reference 2: original f32 PyTorch-equivalent math (loose tolerance
    #      since the kernel uses bf16 weights on the MXU).
    rw1, rb1, rw2, rb2, rw3, rb3 = raw_params
    xf = obs[:, -1, :]
    hf = xf @ rw1 + rb1
    hf = hf * jax.nn.sigmoid(hf)
    hf = hf @ rw2 + rb2
    hf = hf * jax.nn.sigmoid(hf)
    ref_f32 = hf @ rw3 + rb3
    assert jnp.allclose(action, ref_f32, atol=5e-2), "mismatch vs f32 reference"

    # Larger-batch path sanity check (exercises the multi-block grid).
    big_B = 300
    obs_big = jax.random.normal(jax.random.PRNGKey(1), (big_B, n_agent, obs_dim),
                                jnp.float32)
    act_big = fwd(obs_big, params)
    jax.block_until_ready(act_big)
    xb = obs_big[:, -1, :]
    hb = xb @ rw1 + rb1
    hb = hb * jax.nn.sigmoid(hb)
    hb = hb @ rw2 + rb2
    hb = hb * jax.nn.sigmoid(hb)
    ref_big = hb @ rw3 + rb3
    assert act_big.shape == (big_B, action_dim)
    assert jnp.allclose(act_big, ref_big, atol=5e-2), "mismatch vs f32 reference (big B)"

    print("KERNEL_OK")
</pallas_src>

<mosaic_0001>
module attributes {stable_mosaic.version = 11 : i64} {
  func.func @_mlp_kernel(%arg0: i32, %arg1: memref<2x128xbf16, #tpu.memory_space<vmem>>, %arg2: memref<128x256xbf16, #tpu.memory_space<vmem>>, %arg3: memref<1x256xf32, #tpu.memory_space<vmem>>, %arg4: memref<256x256xbf16, #tpu.memory_space<vmem>>, %arg5: memref<1x256xf32, #tpu.memory_space<vmem>>, %arg6: memref<256x128xbf16, #tpu.memory_space<vmem>>, %arg7: memref<1x128xf32, #tpu.memory_space<vmem>>, %arg8: memref<2x128xf32, #tpu.memory_space<vmem>>) attributes {dimension_semantics = [#tpu.dimension_semantics<parallel>], iteration_bounds = array<i64: 1>, scalar_prefetch = 0 : i64, scratch_operands = 0 : i64, tpu.core_type = #tpu.core_type<tc>, window_params = [{transform_indices = @transform_0, window_bounds = array<i64: 2, 128>}, {pipeline_mode = #tpu.pipeline_mode<synchronous>, transform_indices = @transform_1, window_bounds = array<i64: 128, 256>}, {pipeline_mode = #tpu.pipeline_mode<synchronous>, transform_indices = @transform_2, window_bounds = array<i64: 1, 256>}, {pipeline_mode = #tpu.pipeline_mode<synchronous>, transform_indices = @transform_3, window_bounds = array<i64: 256, 256>}, {pipeline_mode = #tpu.pipeline_mode<synchronous>, transform_indices = @transform_4, window_bounds = array<i64: 1, 256>}, {pipeline_mode = #tpu.pipeline_mode<synchronous>, transform_indices = @transform_5, window_bounds = array<i64: 256, 128>}, {pipeline_mode = #tpu.pipeline_mode<synchronous>, transform_indices = @transform_6, window_bounds = array<i64: 1, 128>}, {transform_indices = @transform_7, window_bounds = array<i64: 2, 128>}]} {
    %c0 = arith.constant 0 : index
    %c0_0 = arith.constant 0 : index
    %0 = vector.load %arg1[%c0, %c0_0] : memref<2x128xbf16, #tpu.memory_space<vmem>>, vector<2x128xbf16>
    %c0_1 = arith.constant 0 : index
    %c0_2 = arith.constant 0 : index
    %1 = vector.load %arg2[%c0_1, %c0_2] : memref<128x256xbf16, #tpu.memory_space<vmem>>, vector<128x256xbf16>
    %cst = arith.constant dense<0.000000e+00> : vector<2x256xf32>
    %2 = tpu.matmul %0, %1, %cst {dimension_numbers = #tpu.dot_dimension_numbers<[1], [0], [0], [1], [0, 0, 1, 1], [], []>} : vector<2x128xbf16>, vector<128x256xbf16>, vector<2x256xf32> -> vector<2x256xf32>
    %c0_3 = arith.constant 0 : index
    %c0_4 = arith.constant 0 : index
    %3 = vector.load %arg3[%c0_3, %c0_4] : memref<1x256xf32, #tpu.memory_space<vmem>>, vector<1x256xf32>
    %4 = vector.broadcast %3 : vector<1x256xf32> to vector<2x256xf32>
    %5 = arith.addf %2, %4 : vector<2x256xf32>
    %cst_5 = arith.constant 0.000000e+00 : f32
    %6 = vector.broadcast %cst_5 : f32 to vector<2x256xf32>
    %7 = arith.subf %6, %5 : vector<2x256xf32>
    %8 = math.exp %7 : vector<2x256xf32>
    %cst_6 = arith.constant 1.000000e+00 : f32
    %9 = vector.broadcast %cst_6 : f32 to vector<2x256xf32>
    %10 = arith.addf %9, %8 : vector<2x256xf32>
    %11 = tpu.reciprocal %10 {approx = true} : vector<2x256xf32> -> vector<2x256xf32>
    %12 = arith.mulf %5, %11 : vector<2x256xf32>
    %13 = arith.truncf %12 : vector<2x256xf32> to vector<2x256xbf16>
    %c0_7 = arith.constant 0 : index
    %c0_8 = arith.constant 0 : index
    %14 = vector.load %arg4[%c0_7, %c0_8] : memref<256x256xbf16, #tpu.memory_space<vmem>>, vector<256x256xbf16>
    %cst_9 = arith.constant dense<0.000000e+00> : vector<2x256xf32>
    %15 = tpu.matmul %13, %14, %cst_9 {dimension_numbers = #tpu.dot_dimension_numbers<[1], [0], [0], [1], [0, 0, 1, 1], [], []>} : vector<2x256xbf16>, vector<256x256xbf16>, vector<2x256xf32> -> vector<2x256xf32>
    %c0_10 = arith.constant 0 : index
    %c0_11 = arith.constant 0 : index
    %16 = vector.load %arg5[%c0_10, %c0_11] : memref<1x256xf32, #tpu.memory_space<vmem>>, vector<1x256xf32>
    %17 = vector.broadcast %16 : vector<1x256xf32> to vector<2x256xf32>
    %18 = arith.addf %15, %17 : vector<2x256xf32>
    %cst_12 = arith.constant 0.000000e+00 : f32
    %19 = vector.broadcast %cst_12 : f32 to vector<2x256xf32>
    %20 = arith.subf %19, %18 : vector<2x256xf32>
    %21 = math.exp %20 : vector<2x256xf32>
    %cst_13 = arith.constant 1.000000e+00 : f32
    %22 = vector.broadcast %cst_13 : f32 to vector<2x256xf32>
    %23 = arith.addf %22, %21 : vector<2x256xf32>
    %24 = tpu.reciprocal %23 {approx = true} : vector<2x256xf32> -> vector<2x256xf32>
    %25 = arith.mulf %18, %24 : vector<2x256xf32>
    %26 = arith.truncf %25 : vector<2x256xf32> to vector<2x256xbf16>
    %c0_14 = arith.constant 0 : index
    %c0_15 = arith.constant 0 : index
    %27 = vector.load %arg6[%c0_14, %c0_15] : memref<256x128xbf16, #tpu.memory_space<vmem>>, vector<256x128xbf16>
    %cst_16 = arith.constant dense<0.000000e+00> : vector<2x128xf32>
    %28 = tpu.matmul %26, %27, %cst_16 {dimension_numbers = #tpu.dot_dimension_numbers<[1], [0], [0], [1], [0, 0, 1, 1], [], []>} : vector<2x256xbf16>, vector<256x128xbf16>, vector<2x128xf32> -> vector<2x128xf32>
    %c0_17 = arith.constant 0 : index
    %c0_18 = arith.constant 0 : index
    %29 = vector.load %arg7[%c0_17, %c0_18] : memref<1x128xf32, #tpu.memory_space<vmem>>, vector<1x128xf32>
    %30 = vector.broadcast %29 : vector<1x128xf32> to vector<2x128xf32>
    %31 = arith.addf %28, %30 : vector<2x128xf32>
    %c0_19 = arith.constant 0 : index
    %c0_20 = arith.constant 0 : index
    %32 = vector.load %arg8[%c0_19, %c0_20] : memref<2x128xf32, #tpu.memory_space<vmem>>, vector<2x128xf32>
    tpu.vector_store %arg8[%c0_19, %c0_20], %31 {strides = array<i32>} : memref<2x128xf32, #tpu.memory_space<vmem>>, vector<2x128xf32>,
    return
  }
  func.func @transform_0(%arg0: i32) -> (i32, i32) {
    %c0_i32 = arith.constant 0 : i32
    %c0_i32_0 = arith.constant 0 : i32
    return %arg0, %c0_i32 : i32, i32
  }
  func.func @transform_1(%arg0: i32) -> (i32, i32) {
    %c0_i32 = arith.constant 0 : i32
    %c0_i32_0 = arith.constant 0 : i32
    %c0_i32_1 = arith.constant 0 : i32
    return %c0_i32, %c0_i32_0 : i32, i32
  }
  func.func @transform_2(%arg0: i32) -> (i32, i32) {
    %c0_i32 = arith.constant 0 : i32
    %c0_i32_0 = arith.constant 0 : i32
    %c0_i32_1 = arith.constant 0 : i32
    return %c0_i32, %c0_i32_0 : i32, i32
  }
  func.func @transform_3(%arg0: i32) -> (i32, i32) {
    %c0_i32 = arith.constant 0 : i32
    %c0_i32_0 = arith.constant 0 : i32
    %c0_i32_1 = arith.constant 0 : i32
    return %c0_i32, %c0_i32_0 : i32, i32
  }
  func.func @transform_4(%arg0: i32) -> (i32, i32) {
    %c0_i32 = arith.constant 0 : i32
    %c0_i32_0 = arith.constant 0 : i32
    %c0_i32_1 = arith.constant 0 : i32
    return %c0_i32, %c0_i32_0 : i32, i32
  }
  func.func @transform_5(%arg0: i32) -> (i32, i32) {
    %c0_i32 = arith.constant 0 : i32
    %c0_i32_0 = arith.constant 0 : i32
    %c0_i32_1 = arith.constant 0 : i32
    return %c0_i32, %c0_i32_0 : i32, i32
  }
  func.func @transform_6(%arg0: i32) -> (i32, i32) {
    %c0_i32 = arith.constant 0 : i32
    %c0_i32_0 = arith.constant 0 : i32
    %c0_i32_1 = arith.constant 0 : i32
    return %c0_i32, %c0_i32_0 : i32, i32
  }
  func.func @transform_7(%arg0: i32) -> (i32, i32) {
    %c0_i32 = arith.constant 0 : i32
    %c0_i32_0 = arith.constant 0 : i32
    return %arg0, %c0_i32 : i32, i32
  }
}

</mosaic_0001>

<bundles_post_ra>
// kernel: mlp_agent_forward.1
= control target key start
LH: loop header
LB: loop body
LE: loop exit
PB: predicated region body
PF: predicated region fallthrough
CT: control target
= control target key end

     0   :  { %12 = vsyncpa [#allocation3], 0  ;;  %s1106_s0 = inlined_call_operand.vmem [shape: bf16[2,128], index: 0, kind: input, shape index: {}]   ;;  %s1107_s1 = inlined_call_operand.hbm [shape: bf16[128,256], index: 1, kind: input, shape index: {}]   ;;  %s1108_s2 = inlined_call_operand.vmem [shape: f32[1,256], index: 2, kind: input, shape index: {}]   ;;  %s1109_s3 = inlined_call_operand.hbm [shape: bf16[256,256], index: 3, kind: input, shape index: {}]   ;;  %s1110_s4 = inlined_call_operand.vmem [shape: f32[1,256], index: 4, kind: input, shape index: {}]   ;;  %s1111_s5 = inlined_call_operand.hbm [shape: bf16[256,128], index: 5, kind: input, shape index: {}]   ;;  %s1112_s6 = inlined_call_operand.vmem [shape: f32[1,128], index: 6, kind: input, shape index: {}]   ;;  %s1113_s7 = inlined_call_operand.hbm [shape: f32[2,128], index: 7, kind: output, shape index: {}]  }
   0x1   :  { %13 = vsyncpa [#allocation6], 0 }
   0x2   :  { %14 = vsyncpa [#allocation4], 0  ;;  %s978_s24 = smov [#allocation5]   ;;  %s979_s26 = smov [#allocation2]  }
   0x3   :  { %s36_s25 = sshll.u32 %s978_s24, 4  ;;  %s22_s27 = sshll.u32 %s979_s26, 4  ;;  %s37_s25 = int_to_ptr.vmem [resolvable:$true] %s36_s25  ;;  %s1027_s27 = int_to_ptr.vmem [resolvable:$true] %s22_s27 }
   0x4   :  { %s884_s30 = scalar_lea.hbm %s1109_s3, 4096 }
   0x5   :  { %p885_p0 = scmp.ne.s32.totalorder %s1109_s3, %s884_s30  ;;  %p888_p1 = scmp.lt.u32.totalorder %s884_s30, %s1109_s3 }
   0x7   :  { %p890_p2 = pnand %p888_p1, %p885_p0 }
   0x9   :  { %893 = shalt.err (!%p890_p2)
}
   0xa   :  { %s894_s12 = scalar_lea.vmem %s37_s25, 4096  ;;  %p899_p4 = scmp.lt.s32.totalorder %s37_s25, %s37_s25 }
   0xb   :  { %p895_p3 = scmp.ne.s32.totalorder %s37_s25, %s894_s12  ;;  %p900_p5 = scmp.lt.s32.totalorder %s894_s12, %s894_s12 }
   0xd   :  { %p901_p6 = por %p900_p5, %p899_p4 }
   0xf   :  { %p902_p7 = pnand %p901_p6, %p895_p3 }
  0x11   :  { %905 = shalt.err (!%p902_p7)
}
  0x12   :  { %s980_s13 = smov 128   ;;  %s981_s14 = smov 8  }
  0x13   :  { %42 = dma.hbm_to_vmem [thread:$0]  %s1109_s3, 4096, %s37_s25, [#allocation6], %s980_s13, %s980_s13, %s981_s14  }
  0x14   :  { %s906_s19 = scalar_lea.hbm %s1107_s1, 2048 }
  0x15   :  { %p907_p8 = scmp.ne.s32.totalorder %s1107_s1, %s906_s19  ;;  %p910_p9 = scmp.lt.u32.totalorder %s906_s19, %s1107_s1 }
  0x17   :  { %p912_p10 = pnand %p910_p9, %p907_p8 }
  0x19   :  { %915 = shalt.err (!%p912_p10)
}
  0x1a   :  { %s916_s24 = scalar_lea.vmem %s1027_s27, 2048  ;;  %p921_p12 = scmp.lt.s32.totalorder %s1027_s27, %s1027_s27 }
  0x1b   :  { %p917_p11 = scmp.ne.s32.totalorder %s1027_s27, %s916_s24  ;;  %p922_p13 = scmp.lt.s32.totalorder %s916_s24, %s916_s24 }
  0x1d   :  { %p923_p0 = por %p922_p13, %p921_p12 }
  0x1f   :  { %p924_p1 = pnand %p923_p0, %p917_p11 }
  0x21   :  { %927 = shalt.err (!%p924_p1)
}
  0x22   :  { %28 = dma.hbm_to_vmem [thread:$0]  %s1107_s1, 2048, %s1027_s27, [#allocation3], %s980_s13, %s980_s13, %s981_s14  }
  0x23   :  { %s982_s26 = smov [#allocation7]   ;;  %s928_s8 = scalar_lea.hbm %s1111_s5, 2048 }
  0x24   :  { %s50_s28 = sshll.u32 %s982_s26, 4  ;;  %p929_p2 = scmp.ne.s32.totalorder %s1111_s5, %s928_s8  ;;  %s51_s28 = int_to_ptr.vmem [resolvable:$true] %s50_s28 }
  0x25   :  { %p932_p3 = scmp.lt.u32.totalorder %s928_s8, %s1111_s5 }
  0x27   :  { %p934_p4 = pnand %p932_p3, %p929_p2 }
  0x29   :  { %937 = shalt.err (!%p934_p4)
}
  0x2a   :  { %s938_s15 = scalar_lea.vmem %s51_s28, 2048  ;;  %p943_p6 = scmp.lt.s32.totalorder %s51_s28, %s51_s28 }
  0x2b   :  { %p939_p5 = scmp.ne.s32.totalorder %s51_s28, %s938_s15  ;;  %p944_p7 = scmp.lt.s32.totalorder %s938_s15, %s938_s15 }
  0x2d   :  { %p945_p8 = por %p944_p7, %p943_p6 }
  0x2f   :  { %p946_p9 = pnand %p945_p8, %p939_p5 }
  0x31   :  { %949 = shalt.err (!%p946_p9)
}
  0x32   :  { %s983_s1 = smov 64   ;;  %s984_s27 = smov 4  }
  0x33   :  { %56 = dma.hbm_to_vmem [thread:$0]  %s1111_s5, 2048, %s51_s28, [#allocation6], %s983_s1, %s983_s1, %s984_s27  }
  0x34   :  { %972 = dma.done.wait [#allocation3], 2048  }
  0x35   :  { %973 = vsyncadd [#allocation3], 4294965248 }
  0x36   :  { %974 = dma.done.wait [#allocation6], 6144  }
  0x37   :  { %975 = vsyncadd [#allocation6], 4294961152  ;;  %v985_v0 = vmov 0   ;;  %v780_v1 = vld [vmem:[#allocation2 + $0x4] ss:$8 sps:$4 sm:$0xff]   ;;  %v88_v50 = vlaneseq  ;;  %s986_s20 = smov [#allocation8]  }
  0x38   :  { %210 = vmatprep.mubr.bf16.mxu0 %v985_v0  ;;  %v782_v2 = vld [vmem:[#allocation2] ss:$8 sps:$4 sm:$0xff]   ;;  %178 = vmatprep.subr.bf16.mxu0 %v780_v1  ;;  %v783_v3 = vld [vmem:[#allocation2 + $0x14] ss:$8 sps:$4 sm:$0xff]   ;;  %v785_v4 = vld [vmem:[#allocation2 + $0x10] ss:$8 sps:$4 sm:$0xff]  }
  0x39   :  { %179 = vmatpush1.bf16.msra.mxu0 %v782_v2  ;;  %v786_v5 = vld [vmem:[#allocation2 + $0x24] ss:$8 sps:$4 sm:$0xff]   ;;  %v788_v6 = vld [vmem:[#allocation2 + $0x20] ss:$8 sps:$4 sm:$0xff]   ;;  %v789_v7 = vld [vmem:[#allocation2 + $0x34] ss:$8 sps:$4 sm:$0xff]  }
  0x3a   :  { %180 = vmatprep.subr.bf16.mxu0 %v783_v3  ;;  %v791_v8 = vld [vmem:[#allocation2 + $0x30] ss:$8 sps:$4 sm:$0xff]   ;;  %v792_v9 = vld [vmem:[#allocation2 + $0x44] ss:$8 sps:$4 sm:$0xff]   ;;  %v806_v11 = vld [vmem:[#allocation5] ss:$8 sps:$4 sm:$0xff]  }
  0x3b   :  { %v804_v10 = vld [vmem:[#allocation5 + $0x4] ss:$8 sps:$4 sm:$0xff]   ;;  %v807_v12 = vld [vmem:[#allocation5 + $0x14] ss:$8 sps:$4 sm:$0xff]   ;;  %v794_v13 = vld [vmem:[#allocation2 + $0x40] ss:$8 sps:$4 sm:$0xff]  }
  0x3c   :  { %437 = vmatprep.subr.bf16.mxu1 %v804_v10  ;;  %v809_v14 = vld [vmem:[#allocation5 + $0x10] ss:$8 sps:$4 sm:$0xff]   ;;  %v810_v15 = vld [vmem:[#allocation5 + $0x24] ss:$8 sps:$4 sm:$0xff]   ;;  %v795_v16 = vld [vmem:[#allocation2 + $0x54] ss:$8 sps:$4 sm:$0xff]  }
  0x3d   :  { %181 = vmatpush1.bf16.msra.mxu0 %v785_v4  ;;  %438 = vmatpush1.bf16.msra.mxu1 %v806_v11  ;;  %v797_v17 = vld [vmem:[#allocation2 + $0x50] ss:$8 sps:$4 sm:$0xff]   ;;  %v812_v18 = vld [vmem:[#allocation5 + $0x20] ss:$8 sps:$4 sm:$0xff]   ;;  %v813_v19 = vld [vmem:[#allocation5 + $0x34] ss:$8 sps:$4 sm:$0xff]  }
  0x3e   :  { %182 = vmatprep.subr.bf16.mxu0 %v786_v5  ;;  %439 = vmatprep.subr.bf16.mxu1 %v807_v12  ;;  %v798_v20 = vld [vmem:[#allocation2 + $0x64] ss:$8 sps:$4 sm:$0xff]   ;;  %v815_v21 = vld [vmem:[#allocation5 + $0x30] ss:$8 sps:$4 sm:$0xff]   ;;  %v800_v22 = vld [vmem:[#allocation2 + $0x60] ss:$8 sps:$4 sm:$0xff]  }
  0x3f   :  { %v816_v23 = vld [vmem:[#allocation5 + $0x44] ss:$8 sps:$4 sm:$0xff]   ;;  %v801_v24 = vld [vmem:[#allocation2 + $0x74] ss:$8 sps:$4 sm:$0xff]   ;;  %v818_v25 = vld [vmem:[#allocation5 + $0x40] ss:$8 sps:$4 sm:$0xff]  }
  0x40   :  { %v803_v26 = vld [vmem:[#allocation2 + $0x70] ss:$8 sps:$4 sm:$0xff]   ;;  %v819_v27 = vld [vmem:[#allocation5 + $0x54] ss:$8 sps:$4 sm:$0xff]   ;;  %v69_v29 = vld [vmem:[%s1106_s0] sm:$0x1] }
  0x41   :  { %183 = vmatpush1.bf16.msra.mxu0 %v788_v6  ;;  %440 = vmatpush1.bf16.msra.mxu1 %v809_v14  ;;  %v821_v28 = vld [vmem:[#allocation5 + $0x50] ss:$8 sps:$4 sm:$0xff]   ;;  %v822_v30 = vld [vmem:[#allocation5 + $0x64] ss:$8 sps:$4 sm:$0xff]   ;;  %v824_v31 = vld [vmem:[#allocation5 + $0x60] ss:$8 sps:$4 sm:$0xff]  }
  0x42   :  { %184 = vmatprep.subr.bf16.mxu0 %v789_v7  ;;  %441 = vmatprep.subr.bf16.mxu1 %v810_v15  ;;  %v825_v32 = vld [vmem:[#allocation5 + $0x74] ss:$8 sps:$4 sm:$0xff]   ;;  %v827_v33 = vld [vmem:[#allocation5 + $0x70] ss:$8 sps:$4 sm:$0xff]   ;;  %v828_v34 = vld [vmem:[#allocation5 + $0x84] ss:$8 sps:$4 sm:$0xff]  }
  0x43   :  { %v830_v35 = vld [vmem:[#allocation5 + $0x80] ss:$8 sps:$4 sm:$0xff]   ;;  %v831_v36 = vld [vmem:[#allocation5 + $0x94] ss:$8 sps:$4 sm:$0xff]   ;;  %v833_v37 = vld [vmem:[#allocation5 + $0x90] ss:$8 sps:$4 sm:$0xff]  }
  0x44   :  { %v834_v38 = vld [vmem:[#allocation5 + $0xa4] ss:$8 sps:$4 sm:$0xff]   ;;  %v836_v39 = vld [vmem:[#allocation5 + $0xa0] ss:$8 sps:$4 sm:$0xff]   ;;  %v837_v40 = vld [vmem:[#allocation5 + $0xb4] ss:$8 sps:$4 sm:$0xff]  }
  0x45   :  { %185 = vmatpush1.bf16.msra.mxu0 %v791_v8  ;;  %442 = vmatpush1.bf16.msra.mxu1 %v812_v18  ;;  %v839_v41 = vld [vmem:[#allocation5 + $0xb0] ss:$8 sps:$4 sm:$0xff]   ;;  %v840_v42 = vld [vmem:[#allocation5 + $0xc4] ss:$8 sps:$4 sm:$0xff]   ;;  %v842_v43 = vld [vmem:[#allocation5 + $0xc0] ss:$8 sps:$4 sm:$0xff]  }
  0x46   :  { %186 = vmatprep.subr.bf16.mxu0 %v792_v9  ;;  %443 = vmatprep.subr.bf16.mxu1 %v813_v19  ;;  %v843_v44 = vld [vmem:[#allocation5 + $0xd4] ss:$8 sps:$4 sm:$0xff]   ;;  %v845_v45 = vld [vmem:[#allocation5 + $0xd0] ss:$8 sps:$4 sm:$0xff]   ;;  %v846_v46 = vld [vmem:[#allocation5 + $0xe4] ss:$8 sps:$4 sm:$0xff]  }
  0x47   :  { %v848_v47 = vld [vmem:[#allocation5 + $0xe0] ss:$8 sps:$4 sm:$0xff]   ;;  %v849_v48 = vld [vmem:[#allocation5 + $0xf4] ss:$8 sps:$4 sm:$0xff]   ;;  %v851_v49 = vld [vmem:[#allocation5 + $0xf0] ss:$8 sps:$4 sm:$0xff]  }
  0x48   :  { %v1073_v51 = vshrl.u32 %v88_v50, 7  ;;  %v86_v53 = vld [vmem:[%s1108_s2] sm:$0x3]  ;;  %v854_v15 = vld [vmem:[#allocation7 + $0x48] sm:$0xff]   ;;  %v857_v18 = vld [vmem:[#allocation7 + $0x10] sm:$0xff]   ;;  %s674_s21 = sshll.u32 %s986_s20, 4  ;;  %s675_s21 = int_to_ptr.vmem [resolvable:$true] %s674_s21 }
  0x49   :  { %187 = vmatpush1.bf16.msra.mxu0 %v794_v13  ;;  %444 = vmatpush1.bf16.msra.mxu1 %v815_v21  ;;  %v852_v13 = vld [vmem:[#allocation7 + $0x40] sm:$0xff]   ;;  %v858_v19 = vld [vmem:[#allocation7 + $0x58] sm:$0xff]   ;;  %s950_s22 = scalar_lea.vmem %s675_s21, 32  ;;  %p955_p11 = scmp.lt.s32.totalorder %s675_s21, %s675_s21 }
  0x4a   :  { %188 = vmatprep.subr.bf16.mxu0 %v795_v16  ;;  %445 = vmatprep.subr.bf16.mxu1 %v816_v23  ;;  %v90_v52 = vsub.s32 0, %v1073_v51  ;;  %v94_v54 = vsub.s32 1, %v1073_v51  ;;  %v853_v14 = vld [vmem:[#allocation7] sm:$0xff]   ;;  %v855_v16 = vld [vmem:[#allocation7 + $0x8] sm:$0xff]   ;;  %p951_p10 = scmp.ne.s32.totalorder %s675_s21, %s950_s22  ;;  %p956_p12 = scmp.lt.s32.totalorder %s950_s22, %s950_s22 }
  0x4b   :  { %v860_v21 = vld [vmem:[#allocation7 + $0x60] sm:$0xff]   ;;  %v862_v23 = vld [vmem:[#allocation7 + $0x68] sm:$0xff]  }
  0x4c   :  { %v91_v55 = vrot.slane %v86_v53, %v90_v52  ;;  %v95_v56 = vrot.slane %v86_v53, %v94_v54  ;;  %v732_v53 = vld [vmem:[%s1112_s6] ss:$0 sm:$0xff]  ;;  %p957_p13 = por %p956_p12, %p955_p11 }
  0x4d   :  { %189 = vmatpush1.bf16.msra.mxu0 %v797_v17  ;;  %446 = vmatpush1.bf16.msra.mxu1 %v818_v25  ;;  %v856_v17 = vld [vmem:[#allocation7 + $0x50] sm:$0xff]  }
  0x4e   :  { %190 = vmatprep.subr.bf16.mxu0 %v798_v20  ;;  %447 = vmatprep.subr.bf16.mxu1 %v819_v27  ;;  %v859_v20 = vld [vmem:[#allocation7 + $0x18] sm:$0xff]   ;;  %v864_v25 = vld [vmem:[#allocation7 + $0x70] sm:$0xff]   ;;  %p958_p0 = pnand %p957_p13, %p951_p10 }
  0x4f   :  { %v866_v27 = vld [vmem:[#allocation7 + $0x78] sm:$0xff]  }
  0x51   :  { %191 = vmatpush1.bf16.msra.mxu0 %v800_v22  ;;  %448 = vmatpush1.bf16.msra.mxu1 %v821_v28  ;;  %v861_v22 = vld [vmem:[#allocation7 + $0x20] sm:$0xff]   ;;  %v867_v28 = vld [vmem:[#allocation7 + $0x38] sm:$0xff]  }
  0x52   :  { %192 = vmatprep.subr.bf16.mxu0 %v801_v24  ;;  %449 = vmatprep.subr.bf16.mxu1 %v822_v30  ;;  %v863_v24 = vld [vmem:[#allocation7 + $0x28] sm:$0xff]  }
  0x55   :  { %193 = vmatpush1.bf16.msra.mxu0 %v803_v26  ;;  %450 = vmatpush1.bf16.msra.mxu1 %v824_v31  ;;  %v865_v26 = vld [vmem:[#allocation7 + $0x30] sm:$0xff]  }
  0x56   :  { %451 = vmatprep.subr.bf16.mxu1 %v825_v32  ;;  %749 = vmatprep.subr.bf16.mxu0 %v852_v13 }
  0x58   :  { %211 = vmatmul.mubr.bf16.vlgmr.msra.gmra.mrb[0].mxu0 %v69_v29  ;;  %v265_v29 = vld [vmem:[%s1110_s4] sm:$0x3] }
  0x59   :  { %452 = vmatpush1.bf16.msra.mxu1 %v827_v33  ;;  %750 = vmatpush3.bf16.msra.mxu0 %v853_v14  ;;  %v270_v30 = vrot.slane %v265_v29, %v90_v52  ;;  %v274_v31 = vrot.slane %v265_v29, %v94_v54 }
  0x5a   :  { %453 = vmatprep.subr.bf16.mxu1 %v828_v34  ;;  %751 = vmatprep.subr.bf16.mxu0 %v854_v15 }
  0x5d   :  { %454 = vmatpush1.bf16.msra.mxu1 %v830_v35  ;;  %752 = vmatpush3.bf16.msra.mxu0 %v855_v16 }
  0x5e   :  { %455 = vmatprep.subr.bf16.mxu1 %v831_v36  ;;  %753 = vmatprep.subr.bf16.mxu0 %v856_v17 }
  0x61   :  { %456 = vmatpush1.bf16.msra.mxu1 %v833_v37  ;;  %754 = vmatpush3.bf16.msra.mxu0 %v857_v18 }
  0x62   :  { %457 = vmatprep.subr.bf16.mxu1 %v834_v38  ;;  %755 = vmatprep.subr.bf16.mxu0 %v858_v19 }
  0x65   :  { %458 = vmatpush1.bf16.msra.mxu1 %v836_v39  ;;  %756 = vmatpush3.bf16.msra.mxu0 %v859_v20 }
  0x66   :  { %459 = vmatprep.subr.bf16.mxu1 %v837_v40  ;;  %757 = vmatprep.subr.bf16.mxu0 %v860_v21 }
  0x69   :  { %460 = vmatpush1.bf16.msra.mxu1 %v839_v41  ;;  %758 = vmatpush3.bf16.msra.mxu0 %v861_v22 }
  0x6a   :  { %461 = vmatprep.subr.bf16.mxu1 %v840_v42  ;;  %759 = vmatprep.subr.bf16.mxu0 %v862_v23 }
  0x6d   :  { %462 = vmatpush1.bf16.msra.mxu1 %v842_v43  ;;  %760 = vmatpush3.bf16.msra.mxu0 %v863_v24 }
  0x6e   :  { %463 = vmatprep.subr.bf16.mxu1 %v843_v44  ;;  %761 = vmatprep.subr.bf16.mxu0 %v864_v25 }
  0x71   :  { %464 = vmatpush1.bf16.msra.mxu1 %v845_v45  ;;  %762 = vmatpush3.bf16.msra.mxu0 %v865_v26 }
  0x72   :  { %465 = vmatprep.subr.bf16.mxu1 %v846_v46  ;;  %763 = vmatprep.subr.bf16.mxu0 %v866_v27 }
  0x75   :  { %466 = vmatpush1.bf16.msra.mxu1 %v848_v47  ;;  %764 = vmatpush3.bf16.msra.mxu0 %v867_v28 }
  0x76   :  { %467 = vmatprep.subr.bf16.mxu1 %v849_v48 }
  0x79   :  { %468 = vmatpush1.bf16.msra.mxu1 %v851_v49 }
 0x12b   :  { %v212_v57 = vpop.f32.mrb[0].mxu0 }
 0x12c   :  { %v213_v58 = vadd.f32 %v212_v57, %v91_v55  ;;  %v214_v59 = vpop.f32.mrb[1].mxu0 }
 0x12d   :  { %v215_v60 = vadd.f32 %v214_v59, %v95_v56  ;;  %v216_v61 = vpop.f32.mrb[2].mxu0 }
 0x12e   :  { %v219_v62 = vsub.f32 0.0, %v213_v58  ;;  %v217_v63 = vpop.f32.mrb[3].mxu0 }
 0x12f   :  { %v220_v0 = vsub.f32 0.0, %v215_v60 }
 0x130   :  { %v221_v1 = vmul.f32 1.442695, %v219_v62 }
 0x131   :  { %v223_v2 = vmul.f32 1.442695, %v220_v0 }
 0x132   :  { %868 = vpow2.f32 %v221_v1 }
 0x133   :  { %870 = vpow2.f32 %v223_v2 }
 0x13c   :  { %v869_v3 = vpop.eup %868 }
 0x13d   :  { %v871_v4 = vpop.eup %870  ;;  %v225_v5 = vadd.f32 1.0, %v869_v3 }
 0x13e   :  { %v226_v6 = vadd.f32 1.0, %v871_v4 }
 0x13f   :  { %872 = vrcp.f32 %v225_v5 }
 0x140   :  { %874 = vrcp.f32 %v226_v6 }
 0x149   :  { %v873_v7 = vpop.eup %872 }
 0x14a   :  { %v875_v8 = vpop.eup %874  ;;  %v229_v9 = vmul.f32 %v873_v7, %v213_v58 }
 0x14b   :  { %v230_v10 = vmul.f32 %v875_v8, %v215_v60 }
 0x14c   :  { %v231_v12 = vpack.c.bf16 %v229_v9, %v229_v9 }
 0x14d   :  { %v232_v11 = vpack.c.bf16 %v230_v10, %v230_v10 }
 0x14f   :  { %469 = vmatprep.mubr.bf16.mxu1 %v232_v11 }
 0x150   :  { %470 = vmatmul.mubr.bf16.vlgmr.msra.gmra.mrb[0].mxu1 %v231_v12 }
 0x223   :  { %v471_v32 = vpop.f32.mrb[0].mxu1 }
 0x224   :  { %v472_v33 = vadd.f32 %v471_v32, %v270_v30  ;;  %v473_v34 = vpop.f32.mrb[1].mxu1 }
 0x225   :  { %v474_v35 = vadd.f32 %v473_v34, %v274_v31  ;;  %v475_v36 = vpop.f32.mrb[2].mxu1 }
 0x226   :  { %v478_v37 = vsub.f32 0.0, %v472_v33  ;;  %v476_v38 = vpop.f32.mrb[3].mxu1 }
 0x227   :  { %v479_v39 = vsub.f32 0.0, %v474_v35 }
 0x228   :  { %v480_v40 = vmul.f32 1.442695, %v478_v37 }
 0x229   :  { %v482_v41 = vmul.f32 1.442695, %v479_v39 }
 0x22a   :  { %876 = vpow2.f32 %v480_v40 }
 0x22b   :  { %878 = vpow2.f32 %v482_v41 }
 0x234   :  { %v877_v42 = vpop.eup %876 }
 0x235   :  { %v879_v43 = vpop.eup %878  ;;  %v484_v44 = vadd.f32 1.0, %v877_v42 }
 0x236   :  { %v485_v45 = vadd.f32 1.0, %v879_v43 }
 0x237   :  { %880 = vrcp.f32 %v484_v44 }
 0x238   :  { %882 = vrcp.f32 %v485_v45 }
 0x241   :  { %v881_v46 = vpop.eup %880 }
 0x242   :  { %v883_v47 = vpop.eup %882  ;;  %v488_v48 = vmul.f32 %v881_v46, %v472_v33 }
 0x243   :  { %v489_v49 = vmul.f32 %v883_v47, %v474_v35 }
 0x244   :  { %v490_v51 = vpack.c.bf16 %v488_v48, %v488_v48 }
 0x245   :  { %v491_v50 = vpack.c.bf16 %v489_v49, %v489_v49 }
 0x247   :  { %659 = vmatprep.mubr.bf16.mxu0 %v491_v50 }
 0x248   :  { %660 = vmatmul.mubr.bf16.vlgmr.msra.gmra.mrb[4].mxu0 %v490_v51 }
 0x31b   :  { %v765_v52 = vpop.f32.mrb[4].mxu0 }
 0x31c   :  { %v766_v54 = vpop.f32.mrb[5].mxu0 }
 0x31d   :  { %v767_v55 = vadd.f32 %v766_v54, %v765_v52  ;;  %v768_v56 = vpop.f32.mrb[6].mxu0 }
 0x31e   :  { %v769_v57 = vpop.f32.mrb[7].mxu0 }
 0x31f   :  { %v662_v58 = vadd.f32 %v767_v55, %v732_v53 }
 0x321   :  { %667 = vst [vmem:[#allocation8] sm:$0x3] %v662_v58 }
 0x322   :  { %961 = shalt.err (!%p958_p0)
}
 0x323   :  { %s962_s6 = scalar_lea.hbm %s1113_s7, 32 }
 0x324   :  { %p963_p1 = scmp.ne.s32.totalorder %s1113_s7, %s962_s6  ;;  %p966_p2 = scmp.lt.u32.totalorder %s962_s6, %s1113_s7 }
 0x326   :  { %p968_p3 = pnand %p966_p2, %p963_p1 }
 0x328   :  { %971 = shalt.err (!%p968_p3)
}
 0x329   :  { %677 = dma.vmem_to_hbm [thread:$0]  %s675_s21, 32, %s1113_s7, [#allocation4]  }
 0x32a   :  { %976 = dma.done.wait [#allocation4], 32  }
 0x32b   :  { %977 = vsyncadd [#allocation4], 4294967264 }
 0x32c   :  { %681 = vsyncpa [#allocation3], 1 }
 0x32d   :  { %682 = vsyncpa [#allocation6], 1 }
 0x32e   :  { %683 = vsyncpa [#allocation4], 1 }

</bundles_post_ra>
